<compile_context>
chip_gen: v6e
topology: v6e:2x2x1
jax: 0.10.0
libtpu: 0.0.40
codegen_flags: <defaults>
</compile_context>

<pallas_src>
import functools

import jax
import jax.numpy as jnp
from jax.experimental import pallas as pl
from jax.experimental.pallas import tpu as pltpu


# ---------------------------------------------------------------------------
# Kernels
# ---------------------------------------------------------------------------


def _se_single_pass_kernel(x_ref, wd_ref, bd_ref, wu_ref, bu_ref, o_ref):
    """One (bt, C, HW) slab: pool -> down/relu -> up/sigmoid -> rescale."""
    x = x_ref[...]                                               # (bt, C, HW)

    # Global average pool (f32 accumulation).  1/HW is folded into wd on the
    # host, so a plain sum is enough here.
    pooled = jnp.sum(x.astype(jnp.float32), axis=-1)             # (bt, C)

    # "down" 1x1 conv (+ bias) -> ReLU; weights pre-transposed on host.
    h = jnp.dot(pooled, wd_ref[...], preferred_element_type=jnp.float32)
    h = jnp.maximum(h + bd_ref[...], 0.0)                        # (bt, I)

    # "up" 1x1 conv (+ bias) -> sigmoid (EUP).
    s = jnp.dot(h, wu_ref[...], preferred_element_type=jnp.float32)
    s = jax.nn.sigmoid(s + bu_ref[...])                          # (bt, C)

    # Channel-wise rescale in the I/O dtype (avoids a full-slab f32 copy).
    o_ref[...] = (x * s.astype(x.dtype)[:, :, None]).astype(o_ref.dtype)


def _se_pool_excite_kernel(x_ref, wd_ref, bd_ref, wu_ref, bu_ref, s_ref,
                           acc_ref, *, hw, hw_t):
    """Two-pass fallback, pass 1: accumulate pooled sums over HW tiles, then
    compute the per-channel sigmoid scale on the last tile."""
    hi = pl.program_id(1)

    @pl.when(hi == 0)
    def _():
        acc_ref[...] = jnp.zeros_like(acc_ref)

    x = x_ref[...].astype(jnp.float32)                           # (1, C, hw_t)
    if hw % hw_t != 0:
        # Mask the ragged tail of the last HW tile so garbage lanes never
        # leak into the pooled sum.
        lane = jax.lax.broadcasted_iota(jnp.int32, (1, 1, hw_t), 2) + hi * hw_t
        x = jnp.where(lane < hw, x, 0.0)
    acc_ref[...] += jnp.sum(x, axis=-1)                          # (1, C)

    @pl.when(hi == pl.num_programs(1) - 1)
    def _():
        h = jnp.dot(acc_ref[...], wd_ref[...],
                    preferred_element_type=jnp.float32)
        h = jnp.maximum(h + bd_ref[...], 0.0)
        s = jnp.dot(h, wu_ref[...], preferred_element_type=jnp.float32)
        s = jax.nn.sigmoid(s + bu_ref[...])                      # (1, C)
        s_ref[...] = s[:, None, :]                               # (1, 1, C)


def _se_rescale_kernel(x_ref, s_ref, o_ref):
    """Two-pass fallback, pass 2: rescale one (1, C, hw_t) tile."""
    x = x_ref[...]                                               # (1, C, hw_t)
    scale = s_ref[...][:, 0, :, None].astype(x.dtype)            # (1, C, 1)
    o_ref[...] = (x * scale).astype(o_ref.dtype)


# ---------------------------------------------------------------------------
# Host-side wrapper
# ---------------------------------------------------------------------------


def _vmem_budget():
    """Per-generation (x-block byte cap, vmem_limit_bytes, min grid steps)."""
    # Conservative defaults that are safe on every generation: v7x has only
    # 64 MiB of VMEM per TensorCore and two TCs that both need grid steps.
    cap, limit, min_steps = 4 << 20, 48 << 20, 2
    try:
        vmem = int(pltpu.get_tpu_info().vmem_capacity_bytes)
        if vmem >= (128 << 20):
            # v5e / v6e: 128 MiB VMEM, a single TensorCore -> bigger blocks,
            # fewer grid steps, closer to the HBM roofline.
            cap, limit, min_steps = 8 << 20, 64 << 20, 1
    except Exception:
        pass
    return cap, limit, min_steps


def _const_spec(shape):
    """BlockSpec for grid-invariant operands (weights / biases): constant index
    map and, when supported, a single pipeline buffer (no point double
    buffering data that never changes; frees VMEM for the x blocks)."""
    zeros = (0,) * len(shape)
    index_map = lambda *_: zeros
    if hasattr(pl, "Buffered"):
        try:
            return pl.BlockSpec(shape, index_map,
                                pipeline_mode=pl.Buffered(buffer_count=1))
        except Exception:
            pass
    return pl.BlockSpec(shape, index_map)


def se_block(x_nchw, w_down, b_down, w_up, b_up, *,
             batch_tile=None, hw_tile=None, force_two_pass=False):
    """SEBlock forward.  x_nchw: (B, C, H, W) f32/bf16; returns same shape/dtype.

    w_down: (internal, C), b_down: (internal,), w_up: (C, internal), b_up: (C,)
    — the squeezed 1x1-conv weights of the PyTorch module.
    """
    B, C, H, W = x_nchw.shape
    HW = H * W
    internal = w_down.shape[0]
    dtype = x_nchw.dtype
    itemsize = jnp.dtype(dtype).itemsize

    # No host-side pad or slice: the kernel blocks keep the full HW extent.
    x = x_nchw.reshape(B, C, HW)

    # Pre-transpose weights on the host and fold the 1/HW pooling factor into
    # the "down" weight so the kernel only sum-pools.
    wd_t = (jnp.transpose(w_down) * (1.0 / HW)).astype(jnp.float32)   # (C, I)
    wu_t = jnp.transpose(w_up).astype(jnp.float32)                    # (I, C)
    bd = b_down.reshape(1, internal).astype(jnp.float32)
    bu = b_up.reshape(1, C).astype(jnp.float32)

    block_cap, vmem_limit, min_steps = _vmem_budget()
    fixed_bytes = 4 * (wd_t.size + wu_t.size + bd.size + bu.size)
    per_batch_bytes = C * HW * itemsize

    cost = pl.CostEstimate(
        flops=2 * B * C * HW + 4 * B * C * internal,
        transcendentals=B * C,
        bytes_accessed=2 * B * C * HW * itemsize + fixed_bytes,
    )

    weight_specs = [
        _const_spec((C, internal)),      # w_down^T * (1/HW)
        _const_spec((1, internal)),      # b_down
        _const_spec((internal, C)),      # w_up^T
        _const_spec((1, C)),             # b_up
    ]

    # Batch tile sized from the VMEM budget; cdiv grid handles ragged batches.
    if batch_tile is not None:
        bt = int(batch_tile)
    else:
        bt = max(1, min(B, block_cap // max(per_batch_bytes, 1)))
        # Keep at least `min_steps` grid steps so both v7x TensorCores get work.
        bt = min(bt, max(1, pl.cdiv(B, min_steps)))
    nb = pl.cdiv(B, bt)

    # in + out x blocks are double buffered (4x) + single-buffered weights.
    single_pass_ok = (
        not force_two_pass
        and 4 * bt * per_batch_bytes + 2 * fixed_bytes <= (vmem_limit * 9) // 10
    )

    if single_pass_ok:
        out = pl.pallas_call(
            _se_single_pass_kernel,
            out_shape=jax.ShapeDtypeStruct((B, C, HW), dtype),
            grid_spec=pltpu.PrefetchScalarGridSpec(
                num_scalar_prefetch=0,
                grid=(nb,),
                in_specs=[pl.BlockSpec((bt, C, HW), lambda b: (b, 0, 0))]
                + weight_specs,
                out_specs=pl.BlockSpec((bt, C, HW), lambda b: (b, 0, 0)),
            ),
            compiler_params=pltpu.CompilerParams(
                dimension_semantics=("parallel",),
                vmem_limit_bytes=vmem_limit,
            ),
            cost_estimate=cost,
        )(x, wd_t, bd, wu_t, bu)
        return out.reshape(B, C, H, W)

    # ---- two-pass fallback: a single (1, C, HW) slab does not fit VMEM ----
    if hw_tile is not None:
        hw_t = int(hw_tile)
    else:
        hw_t = (block_cap // max(C * itemsize, 1)) // 128 * 128
        hw_t = max(128, hw_t)
    if hw_t >= HW:
        hw_t = HW                        # full extent (exempt from the 128 rule)
    nhw = pl.cdiv(HW, hw_t)

    # Pass 1: pooled sums over HW tiles -> per-channel scale, shape (B, 1, C).
    scale = pl.pallas_call(
        functools.partial(_se_pool_excite_kernel, hw=HW, hw_t=hw_t),
        out_shape=jax.ShapeDtypeStruct((B, 1, C), jnp.float32),
        grid_spec=pltpu.PrefetchScalarGridSpec(
            num_scalar_prefetch=0,
            grid=(B, nhw),
            in_specs=[pl.BlockSpec((1, C, hw_t), lambda b, h: (b, 0, h))]
            + weight_specs,
            out_specs=pl.BlockSpec((1, 1, C), lambda b, h: (b, 0, 0)),
            scratch_shapes=[pltpu.VMEM((1, C), jnp.float32)],
        ),
        compiler_params=pltpu.CompilerParams(
            dimension_semantics=("parallel", "arbitrary"),
            vmem_limit_bytes=vmem_limit,
        ),
    )(x, wd_t, bd, wu_t, bu)

    # Pass 2: re-read x tile-by-tile and rescale.
    out = pl.pallas_call(
        _se_rescale_kernel,
        out_shape=jax.ShapeDtypeStruct((B, C, HW), dtype),
        grid_spec=pltpu.PrefetchScalarGridSpec(
            num_scalar_prefetch=0,
            grid=(B, nhw),
            in_specs=[
                pl.BlockSpec((1, C, hw_t), lambda b, h: (b, 0, h)),
                pl.BlockSpec((1, 1, C), lambda b, h: (b, 0, 0)),
            ],
            out_specs=pl.BlockSpec((1, C, hw_t), lambda b, h: (b, 0, h)),
        ),
        compiler_params=pltpu.CompilerParams(
            dimension_semantics=("parallel", "parallel"),
            vmem_limit_bytes=vmem_limit,
        ),
        cost_estimate=cost,
    )(x, scale)
    return out.reshape(B, C, H, W)
    # TODO(synk): if the producer can emit channels-last (B, HW, C), a C-on-lanes
    # layout would avoid masked stores for tiny HW (7x7/14x14) late-stage blocks.


def se_block_ref(x, w_down, b_down, w_up, b_up):
    """Pure-JAX reference matching the PyTorch forward."""
    pooled = jnp.mean(x.astype(jnp.float32), axis=(2, 3))        # (B, C)
    h = jnp.maximum(pooled @ w_down.T + b_down, 0.0)             # (B, internal)
    s = jax.nn.sigmoid(h @ w_up.T + b_up)                        # (B, C)
    return (x.astype(jnp.float32) * s[:, :, None, None]).astype(x.dtype)


if __name__ == "__main__":
    def make_inputs(key, B, C, H, W, internal, dtype=jnp.float32):
        kx, kwd, kbd, kwu, kbu = jax.random.split(key, 5)
        x = jax.random.normal(kx, (B, C, H, W), dtype=dtype)
        # Conv2d(C -> internal, k=1) weight is (internal, C, 1, 1); keep (internal, C).
        w_down = jax.random.normal(kwd, (internal, C), dtype=jnp.float32) * 0.1
        b_down = jax.random.normal(kbd, (internal,), dtype=jnp.float32) * 0.1
        # Conv2d(internal -> C, k=1) weight is (C, internal, 1, 1); keep (C, internal).
        w_up = jax.random.normal(kwu, (C, internal), dtype=jnp.float32) * 0.1
        b_up = jax.random.normal(kbu, (C,), dtype=jnp.float32) * 0.1
        return x, w_down, b_down, w_up, b_up

    k1, k2, k3 = jax.random.split(jax.random.PRNGKey(0), 3)

    # 1) Main small demo shape (single-pass path, auto tiling).
    args = make_inputs(k1, B=2, C=4, H=16, W=16, internal=8)
    out = jax.block_until_ready(se_block(*args))
    assert out.shape == (2, 4, 16, 16)
    assert jnp.allclose(out, se_block_ref(*args), atol=1e-5, rtol=1e-5), \
        "single-pass mismatch vs reference"

    # 2) Ragged cdiv batch grid (B=5, batch tile 2 -> last block is partial).
    args = make_inputs(k2, B=5, C=8, H=12, W=12, internal=4)
    out = jax.block_until_ready(se_block(*args, batch_tile=2))
    assert jnp.allclose(out, se_block_ref(*args), atol=1e-5, rtol=1e-5), \
        "ragged-batch mismatch vs reference"

    # 3) Two-pass HW-tiled fallback, forced at a small shape (HW=400, tile=128)
    #    -> exercises the masked ragged last HW tile and the pooled-sum scratch.
    args = make_inputs(k3, B=3, C=8, H=20, W=20, internal=4)
    out = jax.block_until_ready(se_block(*args, force_two_pass=True, hw_tile=128))
    assert jnp.allclose(out, se_block_ref(*args), atol=1e-5, rtol=1e-5), \
        "two-pass fallback mismatch vs reference"

    print("KERNEL_OK")
</pallas_src>

<mosaic_0001>
module attributes {stable_mosaic.version = 11 : i64} {
  func.func @_se_single_pass_kernel(%arg0: i32, %arg1: memref<1x4x256xf32, #tpu.memory_space<vmem>>, %arg2: memref<4x8xf32, #tpu.memory_space<vmem>>, %arg3: memref<1x8xf32, #tpu.memory_space<vmem>>, %arg4: memref<8x4xf32, #tpu.memory_space<vmem>>, %arg5: memref<1x4xf32, #tpu.memory_space<vmem>>, %arg6: memref<1x4x256xf32, #tpu.memory_space<vmem>>) attributes {dimension_semantics = [#tpu.dimension_semantics<parallel>], iteration_bounds = array<i64: 2>, scalar_prefetch = 0 : i64, scratch_operands = 0 : i64, tpu.core_type = #tpu.core_type<tc>, window_params = [{transform_indices = @transform_0, window_bounds = array<i64: 1, 4, 256>}, {pipeline_mode = #tpu.pipeline_mode<synchronous>, transform_indices = @transform_1, window_bounds = array<i64: 4, 8>}, {pipeline_mode = #tpu.pipeline_mode<synchronous>, transform_indices = @transform_2, window_bounds = array<i64: 1, 8>}, {pipeline_mode = #tpu.pipeline_mode<synchronous>, transform_indices = @transform_3, window_bounds = array<i64: 8, 4>}, {pipeline_mode = #tpu.pipeline_mode<synchronous>, transform_indices = @transform_4, window_bounds = array<i64: 1, 4>}, {transform_indices = @transform_5, window_bounds = array<i64: 1, 4, 256>}]} {
    %c0 = arith.constant 0 : index
    %c0_0 = arith.constant 0 : index
    %c0_1 = arith.constant 0 : index
    %0 = vector.load %arg1[%c0, %c0_0, %c0_1] : memref<1x4x256xf32, #tpu.memory_space<vmem>>, vector<1x4x256xf32>
    %cst = arith.constant dense<0.000000e+00> : vector<1x4xf32>
    %1 = vector.multi_reduction <add>, %0, %cst [2] : vector<1x4x256xf32> to vector<1x4xf32>
    %c0_2 = arith.constant 0 : index
    %c0_3 = arith.constant 0 : index
    %2 = vector.load %arg2[%c0_2, %c0_3] : memref<4x8xf32, #tpu.memory_space<vmem>>, vector<4x8xf32>
    %cst_4 = arith.constant dense<0.000000e+00> : vector<1x8xf32>
    %3 = tpu.matmul %1, %2, %cst_4 {dimension_numbers = #tpu.dot_dimension_numbers<[1], [0], [0], [1], [0, 0, 1, 1], [], []>} : vector<1x4xf32>, vector<4x8xf32>, vector<1x8xf32> -> vector<1x8xf32>
    %c0_5 = arith.constant 0 : index
    %c0_6 = arith.constant 0 : index
    %4 = vector.load %arg3[%c0_5, %c0_6] : memref<1x8xf32, #tpu.memory_space<vmem>>, vector<1x8xf32>
    %5 = arith.addf %3, %4 : vector<1x8xf32>
    %cst_7 = arith.constant 0.000000e+00 : f32
    %6 = vector.broadcast %cst_7 : f32 to vector<1x8xf32>
    %7 = arith.maximumf %5, %6 : vector<1x8xf32>
    %c0_8 = arith.constant 0 : index
    %c0_9 = arith.constant 0 : index
    %8 = vector.load %arg4[%c0_8, %c0_9] : memref<8x4xf32, #tpu.memory_space<vmem>>, vector<8x4xf32>
    %cst_10 = arith.constant dense<0.000000e+00> : vector<1x4xf32>
    %9 = tpu.matmul %7, %8, %cst_10 {dimension_numbers = #tpu.dot_dimension_numbers<[1], [0], [0], [1], [0, 0, 1, 1], [], []>} : vector<1x8xf32>, vector<8x4xf32>, vector<1x4xf32> -> vector<1x4xf32>
    %c0_11 = arith.constant 0 : index
    %c0_12 = arith.constant 0 : index
    %10 = vector.load %arg5[%c0_11, %c0_12] : memref<1x4xf32, #tpu.memory_space<vmem>>, vector<1x4xf32>
    %11 = arith.addf %9, %10 : vector<1x4xf32>
    %12 = arith.negf %11 : vector<1x4xf32>
    %13 = math.exp %12 : vector<1x4xf32>
    %cst_13 = arith.constant 1.000000e+00 : f32
    %14 = vector.broadcast %cst_13 : f32 to vector<1x4xf32>
    %15 = arith.addf %14, %13 : vector<1x4xf32>
    %16 = arith.divf %14, %15 : vector<1x4xf32>
    %17 = vector.shape_cast %16 : vector<1x4xf32> to vector<1x4x1xf32>
    %18 = vector.broadcast %17 : vector<1x4x1xf32> to vector<1x4x256xf32>
    %19 = arith.mulf %0, %18 : vector<1x4x256xf32>
    %c0_14 = arith.constant 0 : index
    %c0_15 = arith.constant 0 : index
    %c0_16 = arith.constant 0 : index
    %20 = vector.load %arg6[%c0_14, %c0_15, %c0_16] : memref<1x4x256xf32, #tpu.memory_space<vmem>>, vector<1x4x256xf32>
    tpu.vector_store %arg6[%c0_14, %c0_15, %c0_16], %19 {strides = array<i32>} : memref<1x4x256xf32, #tpu.memory_space<vmem>>, vector<1x4x256xf32>,
    return
  }
  func.func @transform_0(%arg0: i32) -> (i32, i32, i32) {
    %c0_i32 = arith.constant 0 : i32
    %c0_i32_0 = arith.constant 0 : i32
    %c0_i32_1 = arith.constant 0 : i32
    return %arg0, %c0_i32, %c0_i32_0 : i32, i32, i32
  }
  func.func @transform_1(%arg0: i32) -> (i32, i32) {
    %c0_i32 = arith.constant 0 : i32
    %c0_i32_0 = arith.constant 0 : i32
    %c0_i32_1 = arith.constant 0 : i32
    return %c0_i32, %c0_i32_0 : i32, i32
  }
  func.func @transform_2(%arg0: i32) -> (i32, i32) {
    %c0_i32 = arith.constant 0 : i32
    %c0_i32_0 = arith.constant 0 : i32
    %c0_i32_1 = arith.constant 0 : i32
    return %c0_i32, %c0_i32_0 : i32, i32
  }
  func.func @transform_3(%arg0: i32) -> (i32, i32) {
    %c0_i32 = arith.constant 0 : i32
    %c0_i32_0 = arith.constant 0 : i32
    %c0_i32_1 = arith.constant 0 : i32
    return %c0_i32, %c0_i32_0 : i32, i32
  }
  func.func @transform_4(%arg0: i32) -> (i32, i32) {
    %c0_i32 = arith.constant 0 : i32
    %c0_i32_0 = arith.constant 0 : i32
    %c0_i32_1 = arith.constant 0 : i32
    return %c0_i32, %c0_i32_0 : i32, i32
  }
  func.func @transform_5(%arg0: i32) -> (i32, i32, i32) {
    %c0_i32 = arith.constant 0 : i32
    %c0_i32_0 = arith.constant 0 : i32
    %c0_i32_1 = arith.constant 0 : i32
    return %arg0, %c0_i32, %c0_i32_0 : i32, i32, i32
  }
}

</mosaic_0001>

<bundles_post_ra>
// kernel: tpu_custom_call.1
= control target key start
LH: loop header
LB: loop body
LE: loop exit
PB: predicated region body
PF: predicated region fallthrough
CT: control target
= control target key end

     0   :  { %10 = vsyncpa [#allocation3], 0  ;;  %s896_s0 = inlined_call_operand.hbm [shape: f32[2,4,256], index: 0, kind: input, shape index: {}]   ;;  %s897_s1 = inlined_call_operand.vmem [shape: f32[4,8], index: 1, kind: input, shape index: {}]   ;;  %s898_s2 = inlined_call_operand.vmem [shape: f32[1,8], index: 2, kind: input, shape index: {}]   ;;  %s899_s3 = inlined_call_operand.vmem [shape: f32[8,4], index: 3, kind: input, shape index: {}]   ;;  %s900_s4 = inlined_call_operand.vmem [shape: f32[1,4], index: 4, kind: input, shape index: {}]   ;;  %s901_s5 = inlined_call_operand.hbm [shape: f32[2,4,256], index: 5, kind: output, shape index: {}]  }
   0x1   :  { %12 = vsyncpa [#allocation3 + $0x1], 0 }
   0x2   :  { %13 = vsyncpa [#allocation4], 0 }
   0x3   :  { %15 = vsyncpa [#allocation4 + $0x1], 0  ;;  %s739_s18 = smov 0   ;;  %s741_s19 = smov 0  }
   0x4   :  { %s743_s20 = smov 0   ;;  %s745_s21 = smov 0  }
   0x5 LB: > { %s760_s22 = sadd.s32 4294967295, %s702_s21   ;;  %s522_s23 = sadd.s32 4294967294, %s702_s21   ;;  %s702_s21 = sphi %s745_s21, %s918_s21   ;;  %s698_s20 = sphi %s743_s20, %s917_s20   ;;  %s694_s19 = sphi %s741_s19, %s916_s19   ;;  %s690_s18 = sphi %s739_s18, %s915_s18  }
   0x6   : > { %s764_s24 = sadd.s32 1, %s702_s21   ;;  %s28_s25 = sadd.s32 1, %s698_s20 }
   0x7   : > { %s25_s26 = ssub.s32 %s702_s21, %s764_s24  ;;  %p35_p0 = scmp.ne.s32.totalorder %s698_s20, %s694_s19 }
   0x8   : > { %p26_p1 = scmp.eq.s32.totalorder %s25_s26, 0  ;;  %p36_p2 = scmp.eq.s32.totalorder %s702_s21, 0 }
   0x9   : > { %p41_p3 = scmp.ne.s32.totalorder %s694_s19, %s690_s18  ;;  %p42_p4 = scmp.eq.s32.totalorder %s760_s22, 0 }
   0xa   : > { %s776_s27 = scalar_select %p26_p1, %s698_s20, %s28_s25  }
   0xb   : > { %p778_p5 = por %p36_p2, %p35_p0  ;;  %p782_p6 = por %p42_p4, %p41_p3 }
   0xc   : > { %p149_p7 = scmp.eq.s32.totalorder %s760_s22, 1  ;;  %p155_p8 = scmp.eq.s32.totalorder %s522_s23, 1 }
   0xd   : > { %s905_s29 = scalar_select %p782_p6, 1, 0 }
   0xe   : > { %p568_p10 = scmp.lt.s32.totalorder %s702_s21, 2  ;;  %p789_p11 = por %p149_p7, %p35_p0 }
   0xf   : > { %p793_p12 = por %p155_p8, %p41_p3  ;;  %s187_s7 = sand.u32 1, %s698_s20  }
  0x10   : > { %s906_s30 = scalar_select %p789_p11, 1, 0 }
  0x11   : > { %s907_s6 = scalar_select %p793_p12, 1, 0 }
  0x12   : > { %s540_s8 = sshll.u32 %s702_s21, 7  ;;  %s525_s9 = sshll.u32 %s187_s7, 3 }
  0x13   : > { %s802_s12 = scalar_lea.hbm %s896_s0, %s540_s8  ;;  %s191_s13 = scalar_lea.vmem [#allocation2], %s525_s9 }
  0x14   : > { %s199_s14 = sshll.u32 %s191_s13, 4  ;;  %p806_p13 = pnand %p568_p10, %p778_p5  ;;  %s810_s14 = int_to_ptr.vmem [resolvable:$true] %s199_s14 }
  0x15   : > { %s188_s16 = scalar_lea.sflag [#allocation3], %s187_s7  ;;  %s610_s17 = scalar_lea.hbm %s802_s12, 128 }
  0x16   : > { %p611_p2 = scmp.ne.s32.totalorder %s802_s12, %s610_s17  ;;  %p612_p3 = pneg %p806_p13 }
  0x17   : > { %s615_s26 = scalar_lea.hbm %s896_s0, 256  ;;  %p616_p5 = scmp.lt.s32.totalorder %s802_s12, %s896_s0 }
  0x18   : > { %p613_p4 = pnand %p612_p3, %p611_p2  ;;  %p617_p8 = scmp.lt.s32.totalorder %s615_s26, %s610_s17 }
  0x1a   : > { %p614_p7 = pneg %p613_p4  ;;  %p618_p10 = por %p617_p8, %p616_p5 }
  0x1c   : > { %p619_p9 = pnand %p618_p10, %p614_p7 }
  0x1e   : > { %622 = shalt.err (!%p619_p9)
}
  0x1f   : > { %s623_s7 = scalar_lea.vmem %s810_s14, 128  ;;  %s704_s9 = smov [#allocation2]  }
  0x20   : > { %p624_p0 = scmp.ne.s32.totalorder %s810_s14, %s623_s7  ;;  %s628_s10 = sshll.u32 %s704_s9, 4  ;;  %s629_s10 = int_to_ptr.vmem [resolvable:$false] %s628_s10 }
  0x21   : > { %s630_s11 = scalar_lea.vmem %s629_s10, 256  ;;  %p631_p4 = scmp.lt.s32.totalorder %s810_s14, %s629_s10 }
  0x22   : > { %p626_p1 = pnand %p624_p0, %p612_p3  ;;  %p632_p12 = scmp.lt.s32.totalorder %s630_s11, %s623_s7 }
  0x24   : > { %p627_p2 = pneg %p626_p1  ;;  %p633_p11 = por %p632_p12, %p631_p4 }
  0x26   : > { %p634_p6 = pnand %p633_p11, %p627_p2 }
  0x28   : > { %637 = shalt.err (!%p634_p6)
}
  0x29   : > { %563 = dma.hbm_to_vmem [thread:$0]  (!%p806_p13), %s802_s12, 128, %s810_s14, %s188_s16  }
  0x2a   : > { %p909_p9 = scmp.lt.s32.totalorder %s702_s21, 3  ;;  %p910_p7 = scmp.ge.s32.totalorder %s702_s21, 1 }
  0x2c   : > { %p205_p0 = pnand %p910_p7, %p909_p9 }
  0x2d   : > { %s837_s13 = sand.u32 (!%p205_p0), 1, %s694_s19   ;;  %p911_p6 = scmp.ne.s32.totalorder (!%p205_p0), %s905_s29, 0 }
  0x2e   : > { %208 = sbr.rel (%p205_p0) target bundleno = 756 (0x2f4), region = 40  ;;  %s529_s17 = sshll.u32 (!%p205_p0), %s837_s13, 3 }
  0x2f   : > { %s211_s23 = scalar_lea.sflag (!%p205_p0), [#allocation3], %s837_s13  ;;  %s214_s15 = scalar_lea.vmem (!%p205_p0), [#allocation2], %s529_s17 }
  0x33   : > { %681 = dma.done.wait (%p911_p6), %s211_s23, 128  }
  0x34   : > { %683 = vsyncadd (%p911_p6), %s211_s23, 4294967168  ;;  %vm245_vm0 = vcmask 1043456   ;;  %v241_v0 = vld [vmem:[%s214_s15] sm:$0xff]  ;;  %v705_v5 = vmov 0.0   ;;  %vm706_vm1 = vmmov 0   ;;  %v254_v7 = vlaneseq  ;;  %s541_s7 = sshll.u32 %s760_s22, 7 }
  0x35   : > { %v243_v1 = vcombine.high %v241_v0, %v241_v0  ;;  %v246_v2 = vsel %vm245_vm0, %v241_v0, 0.0  ;;  %546 = vmatprep.subr.mxu0 %v705_v5  ;;  %v251_v6 = vld [vmem:[%s897_s1] sm:$0xf]  ;;  %551 = vmatprep.subr.mxu1 %v705_v5  ;;  %vm260_vm2 = vcmask 31744   ;;  %vm339_vm3 = vcmask 64512   ;;  %s240_s9 = scalar_lea.vmem [#allocation5], %s529_s17  ;;  %s450_s15 = scalar_lea.hbm %s901_s5, %s541_s7 }
  0x36   : > { %547 = vmatpush3.msk.msra.mxu0 %vm245_vm0, %v251_v6  ;;  %548 = vmatprep.mubr.msk.f32.mxu0 %vm706_vm1, %v705_v5  ;;  %v255_v8 = vand.u32 127, %v254_v7  ;;  %v257_v9 = vshrl.u32 %v254_v7, 7  ;;  %v337_v13 = vld [vmem:[%s899_s3] sm:$0xff]  ;;  %v707_v29 = vmov 839922192   ;;  %s452_s10 = sshll.u32 %s240_s9, 4  ;;  %s453_s10 = int_to_ptr.vmem [resolvable:$true] %s452_s10 }
  0x37   : > { %v247_v3 = vsel %vm245_vm0, %v243_v1, 0.0  ;;  %553 = vmatprep.mubr.msk.f32.mxu1 %vm706_vm1, %v705_v5  ;;  %552 = vmatpush3.msra.mxu1 %v337_v13  ;;  %v252_v14 = vld [vmem:[%s898_s2] sm:$0x1]  ;;  %v428_v30 = vunpack.c.l.s4 %v707_v29  ;;  %s438_s12 = scalar_lea.sflag [#allocation4], %s837_s13  ;;  %s638_s14 = scalar_lea.vmem %s453_s10, 128 }
  0x38   : > { %v248_v4 = vadd.f32 %v247_v3, %v246_v2  ;;  %v258_v10 = vsub.s32 %v255_v8, %v257_v9  ;;  %v338_v19 = vld [vmem:[%s900_s4] sm:$0x1]  ;;  %v421_v26 = vsub.s32 0, %v257_v9  ;;  %p639_p11 = scmp.ne.s32.totalorder %s453_s10, %s638_s14  ;;  %p912_p12 = scmp.ne.s32.totalorder %s906_s30, 0 }
  0x39   : > { %v429_v31 = vunpack.c.0.s8 %v428_v30  ;;  %s708_s29 = smov [#allocation5]  }
  0x3a   : > { %249 = vadd.xlane.f32.xlu0 %v248_v4  ;;  %p640_p13 = pnand %p639_p11, %p912_p12  ;;  %s642_s16 = sshll.u32 %s708_s29, 4  ;;  %s643_s16 = int_to_ptr.vmem [resolvable:$false] %s642_s16 }
  0x3b   : > { %v432_v32 = vsub.s32 %v429_v31, %v257_v9  ;;  %s644_s22 = scalar_lea.vmem %s643_s16, 256  ;;  %p645_p3 = scmp.lt.s32.totalorder %s453_s10, %s643_s16 }
  0x3c   : > { %p641_p1 = pneg %p640_p13  ;;  %p646_p5 = scmp.lt.s32.totalorder %s644_s22, %s638_s14 }
  0x3e   : > { %p647_p8 = por %p646_p5, %p645_p3 }
  0x40   : > { %p648_p10 = pnand %p647_p8, %p641_p1 }
  0xc3   : > { %v250_v11 = vpop.xlane.xlu0 %249 }
  0xc4   : > { %v259_v12 = vrot.slane %v250_v11, %v258_v10 }
  0xc6   : > { %549 = vmatmul.mubr.msk.f32.vlgmr.msra.gmra.mxu0 %vm260_vm2, %v259_v12 }
 0x186   : > { %v332_v15 = vpop.f32.mrf.mxu0 }
 0x187   : > { %v333_v16 = vadd.f32 %v332_v15, %v252_v14 }
 0x188   : > { %v550_v17 = vpop.f32.mrf.mxu0 }
 0x189   : > { %v336_v18 = vmax.f32 %v333_v16, 0.0 }
 0x18b   : > { %554 = vmatmul.mubr.msk.f32.vlgmr.msra.gmra.mxu1 %vm339_vm3, %v336_v18 }
 0x24b   : > { %v409_v20 = vpop.f32.mrf.mxu1 }
 0x24c   : > { %v410_v21 = vadd.f32 %v409_v20, %v338_v19 }
 0x24d   : > { %v555_v22 = vpop.f32.mrf.mxu1 }
 0x24e   : > { %v534_v23 = vmul.f32 -1.442695, %v410_v21 }
 0x250   : > { %606 = vpow2.f32 %v534_v23 }
 0x25d   : > { %v607_v24 = vpop.eup %606 }
 0x25e   : > { %v416_v25 = vadd.f32 1.0, %v607_v24 }
 0x260   : > { %608 = vrcp.f32 %v416_v25 }
 0x26d   : > { %v609_v27 = vpop.eup %608 }
 0x26e   : > { %v422_v28 = vrot.slane %v609_v27, %v421_v26 }
 0x270   : > { %424 = vbcast.lane.b32.xlu0 %v422_v28, 256 }
 0x2e2   : > { %v425_v33 = vpop.permute.xlu0 %424 }
 0x2e3   : > { %v433_v34 = vrot.slane %v425_v33, %v432_v32 }
 0x2e5   : > { %v435_v35 = vmul.f32 %v433_v34, %v241_v0 }
 0x2e7   : > { %436 = vst [vmem:[%s240_s9] sm:$0xff] %v435_v35 }
 0x2e8   : > { %651 = shalt.err (!%p648_p10)
}
 0x2e9   : > { %s652_s17 = scalar_lea.hbm %s450_s15, 128  ;;  %s656_s26 = scalar_lea.hbm %s901_s5, 256 }
 0x2ea   : > { %p653_p2 = scmp.ne.s32.totalorder %s450_s15, %s652_s17  ;;  %p657_p7 = scmp.lt.s32.totalorder %s450_s15, %s901_s5 }
 0x2eb   : > { %p658_p0 = scmp.lt.s32.totalorder %s656_s26, %s652_s17 }
 0x2ec   : > { %p654_p4 = pnand %p653_p2, %p912_p12 }
 0x2ed   : > { %p659_p6 = por %p658_p0, %p657_p7 }
 0x2ee   : > { %p655_p9 = pneg %p654_p4 }
 0x2f0   : > { %p660_p11 = pnand %p659_p6, %p655_p9 }
 0x2f2   : > { %663 = shalt.err (!%p660_p11)
}
 0x2f3   : > { %558 = dma.vmem_to_hbm [thread:$0]  (%p912_p12), %s453_s10, 128, %s450_s15, %s438_s12  }
 0x2f4 PF: > { %s464_s7 = sand.u32 1, %s690_s18   ;;  %p913_p13 = scmp.ne.s32.totalorder %s907_s6, 0 }
 0x2f5   : > { %p914_p1 = scmp.ge.s32.totalorder %s702_s21, 2  ;;  %s465_s9 = scalar_lea.sflag [#allocation4], %s464_s7 }
 0x2f7   : > { %p565_p3 = pnand %p914_p1, %p913_p13 }
 0x2f9   : > { %p566_p5 = pneg %p565_p3 }
 0x2fb   : > { %685 = dma.done.wait (%p566_p5), %s465_s9, 128  }
 0x2fc   : > { %687 = vsyncadd (%p566_p5), %s465_s9, 4294967168  ;;  %p18_p8 = scmp.ge.s32.totalorder %s764_s24, 4   ;;  %s915_s18 = smov %s694_s19 }
 0x2fd   : > { %s916_s19 = smov %s698_s20  ;;  %s917_s20 = smov %s776_s27 }
 0x2fe   : > { %s918_s21 = smov %s764_s24  ;;  %20 = sbr.rel (!%p18_p8) target bundleno = 5 (0x5), region = 85 }
 0x303   :  { %470 = vsyncpa [#allocation3], 1 }
 0x304   :  { %472 = vsyncpa [#allocation3 + $0x1], 1 }
 0x305   :  { %473 = vsyncpa [#allocation4], 1 }
 0x306   :  { %475 = vsyncpa [#allocation4 + $0x1], 1 }

</bundles_post_ra>
